<compile_context>
chip_gen: v6e
topology: v6e:2x2x1
jax: 0.10.0
libtpu: 0.0.40
codegen_flags: <defaults>
</compile_context>

<pallas_src>
import functools

import jax
import jax.numpy as jnp
import numpy as np
from jax.experimental import pallas as pl
from jax.experimental.pallas import tpu as pltpu


def _round_up(x, m):
    return (x + m - 1) // m * m


def _pick_batch_tile(B, l_pad, c2, max_ks, ocp, vmem_budget_bytes=8 << 20):
    """Batch rows per grid step.

    Big enough to amortize per-step overhead and fill the MXU, small enough to
    stay well inside v7x's smaller VMEM (conservative 8 MiB budget for the
    in-kernel intermediates), and capped so the grid has >= 2 steps (v7x has
    two TensorCores; "parallel" grid axes shard across them).
    """
    per_row = (
        2 * l_pad * c2 * 2          # emb + cemb blocks (bf16)
        + l_pad * c2 * 2            # concatenated x (bf16)
        + l_pad * max_ks * c2 * 2   # im2col unfold (bf16)
        + l_pad * ocp * 4           # f32 conv accumulator
    )
    tb = max(1, vmem_budget_bytes // max(per_row, 1))
    tb = min(tb, 64, B)
    if B > 1:
        tb = min(tb, (B + 1) // 2)  # ensure at least 2 grid steps
    return int(tb)


def _textcnn_kernel(max_ks, emb_ref, cemb_ref, wconv_ref, bconv_ref,
                    limits_ref, fcw_ref, fcb_ref, out_ref):
    """One batch tile: fused im2col conv + relu + masked global max-pool + fc."""
    tb, l_pad, _ = emb_ref.shape
    l_out = l_pad - (max_ks - 1)           # conv output positions (== original L)
    ocp = wconv_ref.shape[1]               # sum(num_channels), lane-padded

    # channels-last activations; the (.., 2E) channel concat happens in VMEM.
    x = jnp.concatenate([emb_ref[...], cemb_ref[...]], axis=-1)   # (TB, Lp, 2E) bf16
    c2 = x.shape[-1]

    # im2col: one big MXU matmul instead of max_ks tiny-K matmuls per branch.
    taps = [x[:, k:k + l_out, :] for k in range(max_ks)]
    x_unf = jnp.concatenate(taps, axis=-1) if max_ks > 1 else taps[0]
    x2d = x_unf.reshape(tb * l_out, max_ks * c2)                  # (TB*L, ks*2E)

    acc = jnp.dot(x2d, wconv_ref[...], preferred_element_type=jnp.float32)
    acc = acc + bconv_ref[...]                                    # bias (f32)
    acc = jnp.maximum(acc, 0.0)                                   # relu
    acc = acc.reshape(tb, l_out, ocp)

    # Mask positions past each branch's valid conv length (and the padded
    # channel columns, whose limit is 0).  ReLU output >= 0 and every branch
    # has >= 1 valid position, so filling with 0 preserves the global max.
    pos = jax.lax.broadcasted_iota(jnp.int32, (tb, l_out, ocp), 1)
    acc = jnp.where(pos < limits_ref[...][None], acc, 0.0)
    enc = jnp.max(acc, axis=1)                                    # (TB, OCP)

    # TODO(synk): nn.Dropout(p) is identity in eval mode; training-mode dropout
    # is not implemented.
    pred = jnp.dot(enc.astype(jnp.bfloat16), fcw_ref[...],
                   preferred_element_type=jnp.float32) + fcb_ref[...]
    out_ref[...] = pred[None].astype(out_ref.dtype)               # (1, TB, NCLSP)


def textcnn_glove_forward(words, params, kernel_sizes, num_channels, num_classes):
    kernel_sizes = tuple(int(k) for k in kernel_sizes)
    num_channels = tuple(int(c) for c in num_channels)
    B, L = words.shape
    E = params["embedding"].shape[1]
    c2 = 2 * E
    max_ks = max(kernel_sizes)
    sum_oc = sum(num_channels)
    ocp = _round_up(sum_oc, 128)           # lane-pad conv output channels
    nclsp = _round_up(num_classes, 128)    # lane-pad fc output -> dense stores
    l_pad = L + max_ks - 1

    tb = _pick_batch_tile(B, l_pad, c2, max_ks, ocp)
    num_tiles = pl.cdiv(B, tb)
    b_pad = num_tiles * tb

    # --- XLA glue: embedding gathers (bf16 tables -> bf16 activations). ---
    # `words` is padded along L with token 0 so one fused conv of width max_ks
    # covers every branch; those positions never reach the output (zero taps in
    # the fused weight + the in-kernel mask).  Batch-pad rows are sliced off.
    words_p = jnp.pad(words.astype(jnp.int32), ((0, b_pad - B), (0, max_ks - 1)))
    emb = jnp.take(params["embedding"].astype(jnp.bfloat16), words_p, axis=0)
    cemb = jnp.take(params["constant_embedding"].astype(jnp.bfloat16), words_p, axis=0)

    # --- pack all conv branches into one fused, lane-padded weight. ---
    w_parts, b_parts, lim_parts = [], [], []
    for i, (ks, oc) in enumerate(zip(kernel_sizes, num_channels)):
        w = params[f"conv{i}_w"]                                   # (ks, 2E, oc)
        w_parts.append(jnp.pad(w, ((0, max_ks - ks), (0, 0), (0, 0))))
        b_parts.append(params[f"conv{i}_b"])
        lim_parts.append(jnp.full((oc,), L - ks + 1, jnp.int32))
    w_fused = jnp.concatenate(w_parts, axis=-1)                    # (max_ks, 2E, sum_oc)
    w_fused = jnp.pad(w_fused, ((0, 0), (0, 0), (0, ocp - sum_oc)))
    w_fused = w_fused.reshape(max_ks * c2, ocp).astype(jnp.bfloat16)
    b_fused = jnp.pad(jnp.concatenate(b_parts), (0, ocp - sum_oc))
    b_fused = b_fused.reshape(1, ocp).astype(jnp.float32)
    limits = jnp.pad(jnp.concatenate(lim_parts), (0, ocp - sum_oc))
    limits = limits.reshape(1, ocp)

    fc_w = jnp.pad(params["fc_w"], ((0, ocp - sum_oc), (0, nclsp - num_classes)))
    fc_w = fc_w.astype(jnp.bfloat16)
    fc_b = jnp.pad(params["fc_b"], (0, nclsp - num_classes))
    fc_b = fc_b.reshape(1, nclsp).astype(jnp.float32)

    kernel = functools.partial(_textcnn_kernel, max_ks)
    const2d = lambda g: (0, 0)   # fixed block index -> no re-DMA after step 0

    out = pl.pallas_call(
        kernel,
        out_shape=jax.ShapeDtypeStruct((num_tiles, tb, nclsp), jnp.float32),
        grid=(num_tiles,),
        in_specs=[
            pl.BlockSpec((tb, l_pad, E), lambda g: (g, 0, 0)),     # emb
            pl.BlockSpec((tb, l_pad, E), lambda g: (g, 0, 0)),     # cemb
            pl.BlockSpec((max_ks * c2, ocp), const2d),             # fused conv W
            pl.BlockSpec((1, ocp), const2d),                       # fused conv b
            pl.BlockSpec((1, ocp), const2d),                       # valid lengths
            pl.BlockSpec((ocp, nclsp), const2d),                   # fc W
            pl.BlockSpec((1, nclsp), const2d),                     # fc b
        ],
        out_specs=pl.BlockSpec((1, tb, nclsp), lambda g: (g, 0, 0)),
        compiler_params=pltpu.CompilerParams(
            dimension_semantics=("parallel",),   # batch tiles shard across TCs
        ),
    )(emb, cemb, w_fused, b_fused, limits, fc_w, fc_b)

    return out.reshape(b_pad, nclsp)[:B, :num_classes]


def _reference_forward(words, params, kernel_sizes, num_channels, num_classes):
    """Pure-JAX f32 reference mirroring the PyTorch forward (eval mode)."""
    emb = jnp.take(params["embedding"], words, axis=0)
    cemb = jnp.take(params["constant_embedding"], words, axis=0)
    x = jnp.concatenate([emb, cemb], axis=-1).astype(jnp.float32)  # (B, L, 2E)
    B, L, _ = x.shape
    feats = []
    for i, (ks, oc) in enumerate(zip(kernel_sizes, num_channels)):
        w = params[f"conv{i}_w"]  # (ks, 2E, oc)
        b = params[f"conv{i}_b"]  # (oc,)
        l_out = L - ks + 1
        acc = jnp.zeros((B, l_out, oc), jnp.float32)
        for k in range(ks):
            acc = acc + jnp.einsum("blc,co->blo", x[:, k:k + l_out, :], w[k])
        acc = jnp.maximum(acc + b[None, None, :], 0.0)
        feats.append(jnp.max(acc, axis=1))
    enc = jnp.concatenate(feats, axis=-1)
    return enc @ params["fc_w"] + params["fc_b"][None, :]


if __name__ == "__main__":
    # Small, module-consistent configuration.
    vocab_size = 50
    embedding_dim = 16        # 2E = 32 conv input channels
    kernel_sizes = (3, 4, 5)
    num_channels = (8, 8, 8)
    num_classes = 4
    B, L = 2, 16

    key = jax.random.PRNGKey(0)
    keys = jax.random.split(key, 3 + 2 * len(kernel_sizes) + 2)

    params = {
        "embedding": jax.random.normal(keys[0], (vocab_size, embedding_dim), jnp.float32) * 0.1,
        "constant_embedding": jax.random.normal(keys[1], (vocab_size, embedding_dim), jnp.float32) * 0.1,
    }
    kidx = 3
    for i, (ks, oc) in enumerate(zip(kernel_sizes, num_channels)):
        params[f"conv{i}_w"] = (
            jax.random.normal(keys[kidx], (ks, 2 * embedding_dim, oc), jnp.float32) * 0.1
        )
        params[f"conv{i}_b"] = (
            jax.random.normal(keys[kidx + 1], (oc,), jnp.float32) * 0.1
        )
        kidx += 2
    params["fc_w"] = (
        jax.random.normal(keys[kidx], (sum(num_channels), num_classes), jnp.float32) * 0.1
    )
    params["fc_b"] = jax.random.normal(keys[kidx + 1], (num_classes,), jnp.float32) * 0.1

    words = jax.random.randint(keys[2], (B, L), 0, vocab_size, dtype=jnp.int32)

    pred = textcnn_glove_forward(words, params, kernel_sizes, num_channels, num_classes)
    pred = jax.block_until_ready(pred)

    ref = _reference_forward(words, params, kernel_sizes, num_channels, num_classes)
    # bf16 MXU operands with f32 accumulation -> bf16-appropriate tolerance.
    np.testing.assert_allclose(np.asarray(pred), np.asarray(ref), rtol=2e-2, atol=2e-2)

    print("KERNEL_OK")
</pallas_src>

<mosaic_0001>
module attributes {stable_mosaic.version = 11 : i64} {
  func.func @_textcnn_kernel(%arg0: i32, %arg1: memref<1x20x16xbf16, #tpu.memory_space<vmem>>, %arg2: memref<1x20x16xbf16, #tpu.memory_space<vmem>>, %arg3: memref<160x128xbf16, #tpu.memory_space<vmem>>, %arg4: memref<1x128xf32, #tpu.memory_space<vmem>>, %arg5: memref<1x128xi32, #tpu.memory_space<vmem>>, %arg6: memref<128x128xbf16, #tpu.memory_space<vmem>>, %arg7: memref<1x128xf32, #tpu.memory_space<vmem>>, %arg8: memref<1x1x128xf32, #tpu.memory_space<vmem>>) attributes {dimension_semantics = [#tpu.dimension_semantics<parallel>], iteration_bounds = array<i64: 2>, scalar_prefetch = 0 : i64, scratch_operands = 0 : i64, tpu.core_type = #tpu.core_type<tc>, window_params = [{transform_indices = @transform_0, window_bounds = array<i64: 1, 20, 16>}, {transform_indices = @transform_1, window_bounds = array<i64: 1, 20, 16>}, {pipeline_mode = #tpu.pipeline_mode<synchronous>, transform_indices = @transform_2, window_bounds = array<i64: 160, 128>}, {pipeline_mode = #tpu.pipeline_mode<synchronous>, transform_indices = @transform_3, window_bounds = array<i64: 1, 128>}, {pipeline_mode = #tpu.pipeline_mode<synchronous>, transform_indices = @transform_4, window_bounds = array<i64: 1, 128>}, {pipeline_mode = #tpu.pipeline_mode<synchronous>, transform_indices = @transform_5, window_bounds = array<i64: 128, 128>}, {pipeline_mode = #tpu.pipeline_mode<synchronous>, transform_indices = @transform_6, window_bounds = array<i64: 1, 128>}, {transform_indices = @transform_7, window_bounds = array<i64: 1, 1, 128>}]} {
    %c0 = arith.constant 0 : index
    %c0_0 = arith.constant 0 : index
    %c0_1 = arith.constant 0 : index
    %0 = vector.load %arg1[%c0, %c0_0, %c0_1] : memref<1x20x16xbf16, #tpu.memory_space<vmem>>, vector<1x20x16xbf16>
    %c0_2 = arith.constant 0 : index
    %c0_3 = arith.constant 0 : index
    %c0_4 = arith.constant 0 : index
    %1 = vector.load %arg2[%c0_2, %c0_3, %c0_4] : memref<1x20x16xbf16, #tpu.memory_space<vmem>>, vector<1x20x16xbf16>
    %2 = tpu.concatenate %0, %1 in 2 : vector<1x20x16xbf16>, vector<1x20x16xbf16> -> vector<1x20x32xbf16>
    %3 = vector.extract_strided_slice %2 {offsets = [0, 0, 0], sizes = [1, 16, 32], strides = [1, 1, 1]} : vector<1x20x32xbf16> to vector<1x16x32xbf16>
    %4 = vector.extract_strided_slice %2 {offsets = [0, 1, 0], sizes = [1, 16, 32], strides = [1, 1, 1]} : vector<1x20x32xbf16> to vector<1x16x32xbf16>
    %5 = vector.extract_strided_slice %2 {offsets = [0, 2, 0], sizes = [1, 16, 32], strides = [1, 1, 1]} : vector<1x20x32xbf16> to vector<1x16x32xbf16>
    %6 = vector.extract_strided_slice %2 {offsets = [0, 3, 0], sizes = [1, 16, 32], strides = [1, 1, 1]} : vector<1x20x32xbf16> to vector<1x16x32xbf16>
    %7 = vector.extract_strided_slice %2 {offsets = [0, 4, 0], sizes = [1, 16, 32], strides = [1, 1, 1]} : vector<1x20x32xbf16> to vector<1x16x32xbf16>
    %8 = tpu.concatenate %3, %4, %5, %6, %7 in 2 : vector<1x16x32xbf16>, vector<1x16x32xbf16>, vector<1x16x32xbf16>, vector<1x16x32xbf16>, vector<1x16x32xbf16> -> vector<1x16x160xbf16>
    %9 = vector.shape_cast %8 : vector<1x16x160xbf16> to vector<16x160xbf16>
    %c0_5 = arith.constant 0 : index
    %c0_6 = arith.constant 0 : index
    %10 = vector.load %arg3[%c0_5, %c0_6] : memref<160x128xbf16, #tpu.memory_space<vmem>>, vector<160x128xbf16>
    %cst = arith.constant dense<0.000000e+00> : vector<16x128xf32>
    %11 = tpu.matmul %9, %10, %cst {dimension_numbers = #tpu.dot_dimension_numbers<[1], [0], [0], [1], [0, 0, 1, 1], [], []>} : vector<16x160xbf16>, vector<160x128xbf16>, vector<16x128xf32> -> vector<16x128xf32>
    %c0_7 = arith.constant 0 : index
    %c0_8 = arith.constant 0 : index
    %12 = vector.load %arg4[%c0_7, %c0_8] : memref<1x128xf32, #tpu.memory_space<vmem>>, vector<1x128xf32>
    %13 = vector.broadcast %12 : vector<1x128xf32> to vector<16x128xf32>
    %14 = arith.addf %11, %13 : vector<16x128xf32>
    %cst_9 = arith.constant 0.000000e+00 : f32
    %15 = vector.broadcast %cst_9 : f32 to vector<16x128xf32>
    %16 = arith.maximumf %14, %15 : vector<16x128xf32>
    %17 = vector.shape_cast %16 : vector<16x128xf32> to vector<1x16x128xf32>
    %18 = tpu.iota {dimensions = array<i32: 1>} : vector<1x16x128xi32>
    %c0_10 = arith.constant 0 : index
    %c0_11 = arith.constant 0 : index
    %19 = vector.load %arg5[%c0_10, %c0_11] : memref<1x128xi32, #tpu.memory_space<vmem>>, vector<1x128xi32>
    %20 = vector.shape_cast %19 : vector<1x128xi32> to vector<1x1x128xi32>
    %21 = vector.broadcast %20 : vector<1x1x128xi32> to vector<1x16x128xi32>
    %22 = arith.cmpi slt, %18, %21 : vector<1x16x128xi32>
    %cst_12 = arith.constant 0.000000e+00 : f32
    %23 = vector.broadcast %cst_12 : f32 to vector<1x16x128xf32>
    %24 = arith.select %22, %17, %23 : vector<1x16x128xi1>, vector<1x16x128xf32>
    %cst_13 = arith.constant dense<0xFF800000> : vector<1x128xf32>
    %25 = vector.multi_reduction <maximumf>, %24, %cst_13 [1] : vector<1x16x128xf32> to vector<1x128xf32>
    %26 = arith.truncf %25 : vector<1x128xf32> to vector<1x128xbf16>
    %c0_14 = arith.constant 0 : index
    %c0_15 = arith.constant 0 : index
    %27 = vector.load %arg6[%c0_14, %c0_15] : memref<128x128xbf16, #tpu.memory_space<vmem>>, vector<128x128xbf16>
    %cst_16 = arith.constant dense<0.000000e+00> : vector<1x128xf32>
    %28 = tpu.matmul %26, %27, %cst_16 {dimension_numbers = #tpu.dot_dimension_numbers<[1], [0], [0], [1], [0, 0, 1, 1], [], []>} : vector<1x128xbf16>, vector<128x128xbf16>, vector<1x128xf32> -> vector<1x128xf32>
    %c0_17 = arith.constant 0 : index
    %c0_18 = arith.constant 0 : index
    %29 = vector.load %arg7[%c0_17, %c0_18] : memref<1x128xf32, #tpu.memory_space<vmem>>, vector<1x128xf32>
    %30 = arith.addf %28, %29 : vector<1x128xf32>
    %31 = vector.shape_cast %30 : vector<1x128xf32> to vector<1x1x128xf32>
    %c0_19 = arith.constant 0 : index
    %c0_20 = arith.constant 0 : index
    %c0_21 = arith.constant 0 : index
    %32 = vector.load %arg8[%c0_19, %c0_20, %c0_21] : memref<1x1x128xf32, #tpu.memory_space<vmem>>, vector<1x1x128xf32>
    tpu.vector_store %arg8[%c0_19, %c0_20, %c0_21], %31 {strides = array<i32>} : memref<1x1x128xf32, #tpu.memory_space<vmem>>, vector<1x1x128xf32>,
    return
  }
  func.func @transform_0(%arg0: i32) -> (i32, i32, i32) {
    %c0_i32 = arith.constant 0 : i32
    %c0_i32_0 = arith.constant 0 : i32
    %c0_i32_1 = arith.constant 0 : i32
    return %arg0, %c0_i32, %c0_i32_0 : i32, i32, i32
  }
  func.func @transform_1(%arg0: i32) -> (i32, i32, i32) {
    %c0_i32 = arith.constant 0 : i32
    %c0_i32_0 = arith.constant 0 : i32
    %c0_i32_1 = arith.constant 0 : i32
    return %arg0, %c0_i32, %c0_i32_0 : i32, i32, i32
  }
  func.func @transform_2(%arg0: i32) -> (i32, i32) {
    %c0_i32 = arith.constant 0 : i32
    %c0_i32_0 = arith.constant 0 : i32
    %c0_i32_1 = arith.constant 0 : i32
    return %c0_i32, %c0_i32_0 : i32, i32
  }
  func.func @transform_3(%arg0: i32) -> (i32, i32) {
    %c0_i32 = arith.constant 0 : i32
    %c0_i32_0 = arith.constant 0 : i32
    %c0_i32_1 = arith.constant 0 : i32
    return %c0_i32, %c0_i32_0 : i32, i32
  }
  func.func @transform_4(%arg0: i32) -> (i32, i32) {
    %c0_i32 = arith.constant 0 : i32
    %c0_i32_0 = arith.constant 0 : i32
    %c0_i32_1 = arith.constant 0 : i32
    return %c0_i32, %c0_i32_0 : i32, i32
  }
  func.func @transform_5(%arg0: i32) -> (i32, i32) {
    %c0_i32 = arith.constant 0 : i32
    %c0_i32_0 = arith.constant 0 : i32
    %c0_i32_1 = arith.constant 0 : i32
    return %c0_i32, %c0_i32_0 : i32, i32
  }
  func.func @transform_6(%arg0: i32) -> (i32, i32) {
    %c0_i32 = arith.constant 0 : i32
    %c0_i32_0 = arith.constant 0 : i32
    %c0_i32_1 = arith.constant 0 : i32
    return %c0_i32, %c0_i32_0 : i32, i32
  }
  func.func @transform_7(%arg0: i32) -> (i32, i32, i32) {
    %c0_i32 = arith.constant 0 : i32
    %c0_i32_0 = arith.constant 0 : i32
    %c0_i32_1 = arith.constant 0 : i32
    return %arg0, %c0_i32, %c0_i32_0 : i32, i32, i32
  }
}

</mosaic_0001>

<bundles_post_ra>
// kernel: tpu_custom_call.1
= control target key start
LH: loop header
LB: loop body
LE: loop exit
PB: predicated region body
PF: predicated region fallthrough
CT: control target
= control target key end

     0   :  { %12 = vsyncpa [#allocation3], 0  ;;  %s1199_s0 = inlined_call_operand.vmem [shape: bf16[2,20,16], index: 0, kind: input, shape index: {}]   ;;  %s1200_s1 = inlined_call_operand.vmem [shape: bf16[2,20,16], index: 1, kind: input, shape index: {}]   ;;  %s1201_s2 = inlined_call_operand.vmem [shape: bf16[160,128], index: 2, kind: input, shape index: {}]   ;;  %s1202_s3 = inlined_call_operand.vmem [shape: f32[1,128], index: 3, kind: input, shape index: {}]   ;;  %s1203_s4 = inlined_call_operand.vmem [shape: s32[1,128], index: 4, kind: input, shape index: {}]   ;;  %s1204_s5 = inlined_call_operand.hbm [shape: bf16[128,128], index: 5, kind: input, shape index: {}]   ;;  %s1205_s6 = inlined_call_operand.vmem [shape: f32[1,128], index: 6, kind: input, shape index: {}]   ;;  %s1206_s7 = inlined_call_operand.hbm [shape: f32[2,1,128], index: 7, kind: output, shape index: {}]  }
   0x1   :  { %13 = vsyncpa [#allocation4], 0 }
   0x2   :  { %15 = vsyncpa [#allocation4 + $0x1], 0  ;;  %s1033_s24 = smov 0   ;;  %s1035_s25 = smov 0  }
   0x3   :  { %s1037_s26 = smov 0   ;;  %s1039_s27 = smov 0  }
   0x4 LB: > { %s1054_s28 = sadd.s32 4294967295, %s980_s27   ;;  %s743_s29 = sadd.s32 4294967294, %s980_s27   ;;  %s980_s27 = sphi %s1039_s27, %s1214_s27   ;;  %s976_s26 = sphi %s1037_s26, %s1213_s26   ;;  %s972_s25 = sphi %s1035_s25, %s1212_s25   ;;  %s968_s24 = sphi %s1033_s24, %s1211_s24  }
   0x5   : > { %s1058_s30 = sadd.s32 1, %s980_s27   ;;  %s185_s8 = sadd.s32 1, %s976_s26 }
   0x6   : > { %s182_s9 = ssub.s32 %s980_s27, %s1058_s30  ;;  %p195_p0 = scmp.ne.s32.totalorder %s976_s26, %s972_s25 }
   0x7   : > { %p183_p1 = scmp.eq.s32.totalorder %s182_s9, 0  ;;  %p196_p2 = scmp.eq.s32.totalorder %s1054_s28, 1 }
   0x8   : > { %p201_p3 = scmp.ne.s32.totalorder %s972_s25, %s968_s24  ;;  %p202_p4 = scmp.eq.s32.totalorder %s743_s29, 1 }
   0x9   : > { %s1069_s10 = scalar_select %p183_p1, %s976_s26, %s185_s8  }
   0xa   : > { %p1071_p5 = por %p196_p2, %p195_p0  ;;  %p1075_p6 = por %p202_p4, %p201_p3 }
   0xb   : > { %p744_p7 = scmp.ge.s32.totalorder %s980_s27, 1  ;;  %p209_p8 = scmp.lt.s32.totalorder %s980_s27, 3 }
   0xc   : > { %s1208_s12 = scalar_select %p1075_p6, 1, 0 }
   0xd   : > { %p823_p9 = scmp.eq.s32.totalorder %s1054_s28, 0  ;;  %p1082_p10 = pnand %p744_p7, %p209_p8 }
   0xe   : > { %s982_s14 = smov [#allocation2]  }
   0xf   : > { %s230_s15 = sshll.u32 %s982_s14, 4  ;;  %p815_p11 = pneg %p1082_p10  ;;  %s231_s15 = int_to_ptr.vmem [resolvable:$true] %s230_s15 }
  0x10   : > { %s901_s16 = scalar_lea.vmem %s231_s15, 1024  ;;  %p909_p3 = scmp.lt.s32.totalorder %s231_s15, %s231_s15 }
  0x11   : > { %p816_p12 = pnand %p823_p9, %p815_p11  ;;  %p902_p0 = scmp.ne.s32.totalorder %s231_s15, %s901_s16 }
  0x12   : > { %p910_p4 = scmp.lt.s32.totalorder %s901_s16, %s901_s16 }
  0x13   : > { %p892_p13 = pneg %p816_p12 }
  0x14   : > { %p911_p6 = por %p910_p4, %p909_p3 }
  0x15   : > { %p904_p1 = pnand %p902_p0, %p892_p13 }
  0x17   : > { %p905_p2 = pneg %p904_p1 }
  0x19   : > { %p912_p7 = pnand %p911_p6, %p905_p2 }
  0x1b   : > { %915 = shalt.err (!%p912_p7)
}
  0x1c   : > { %s983_s17 = smov 64   ;;  %s984_s18 = smov 4  }
  0x1d   : > { %818 = dma.hbm_to_vmem [thread:$0]  (!%p816_p12), %s1204_s5, 1024, %s231_s15, [#allocation3], %s983_s17, %s983_s17, %s984_s18  }
  0x1e   : > { %265 = sbr.rel (%p1082_p10) target bundleno = 717 (0x2cd), region = 48 }
  0x23   : > { %959 = dma.done.wait (%p823_p9), [#allocation3], 1024  }
  0x24   : > { %961 = vsyncadd (%p823_p9), [#allocation3], 4294966272  ;;  %p301_p8 = scmp.lt.s32.totalorder %s1054_s28, 1  ;;  %s985_s15 = smov 16   ;;  %v872_v2 = vld [vmem:[%s1201_s2 + $0x38] sm:$0xff]   ;;  %v986_v3 = vmov 0   ;;  %v525_v55 = vlaneseq }
  0x25   : > { %482 = vmatprep.subr.bf16.mxu0 %v986_v3  ;;  %v873_v4 = vld [vmem:[%s1201_s2 + $0x30] sm:$0xff]   ;;  %v874_v5 = vld [vmem:[%s1201_s2 + $0x28] sm:$0xff]   ;;  %v875_v6 = vld [vmem:[%s1201_s2 + $0x20] sm:$0xff]   ;;  %vm338_vm0 = vcmask 130048   ;;  %vm378_vm1 = vcmask 1045504   ;;  %vm382_vm2 = vcmask 261120  }
  0x26   : > { %s302_s21 = scalar_select %p301_p8, %s1054_s28, 1  ;;  %483 = vmatpush1.bf16.msra.mxu0 %v872_v2  ;;  %v876_v7 = vld [vmem:[%s1201_s2 + $0x18] sm:$0xff]   ;;  %v877_v8 = vld [vmem:[%s1201_s2 + $0x10] sm:$0xff]   ;;  %v878_v9 = vld [vmem:[%s1201_s2 + $0x8] sm:$0xff]   ;;  %v987_v25 = vmov 0.0   ;;  %vm360_vm5 = vcmask 1046528  }
  0x27   : > { %484 = vmatprep.subr.bf16.mxu0 %v986_v3  ;;  %v879_v10 = vld [vmem:[%s1201_s2] sm:$0xff]   ;;  %v880_v11 = vld [vmem:[%s1201_s2 + $0x48] sm:$0xff]   ;;  %v882_v21 = vld [vmem:[#allocation2 + $0x38] sm:$0xff]   ;;  %788 = vmatprep.subr.bf16.mxu1 %v987_v25  ;;  %vm345_vm3 = vsmask.f32 7424  ;;  %s989_s23 = smov 96  }
  0x28   : > { %s808_s22 = smul.u32 12, %s302_s21  ;;  %v881_v13 = vld [vmem:[%s1201_s2 + $0x40] sm:$0xff]   ;;  %789 = vmatpush3.bf16.msra.mxu1 %v882_v21  ;;  %v883_v30 = vld [vmem:[#allocation2 + $0x30] sm:$0xff]   ;;  %vm366_vm4 = vsmask.f32 6400  ;;  %s990_s29 = smov 64  }
  0x29   : > { %790 = vmatprep.subr.bf16.mxu1 %v987_v25  ;;  %vm385_vm6 = vcmask 523264   ;;  %vm388_vm7 = vcmask 785408   ;;  %v884_v49 = vld [vmem:[#allocation2 + $0x28] sm:$0xff]   ;;  %v885_v50 = vld [vmem:[#allocation2 + $0x20] sm:$0xff]   ;;  %v886_v51 = vld [vmem:[#allocation2 + $0x18] sm:$0xff]   ;;  %vm991_vm8 = vmmov 0  }
  0x2a   : > { %s310_s8 = scalar_lea.vmem %s1200_s1, %s808_s22  ;;  %s1107_s13 = scalar_lea.vmem %s1199_s0, %s808_s22  ;;  %485 = vmatpush1.bf16.msra.mxu0 %v873_v4  ;;  %v887_v52 = vld [vmem:[#allocation2 + $0x10] sm:$0xff]   ;;  %v888_v53 = vld [vmem:[#allocation2 + $0x8] sm:$0xff]   ;;  %804 = vmatprep.mubr.msk.bf16.mxu1 %vm991_vm8, %v987_v25  ;;  %v889_v54 = vld [vmem:[#allocation2] sm:$0xff]   ;;  %v526_v58 = vshrl.u32 %v525_v55, 7 }
  0x2b   : > { %v868_v0 = vld [vmem:[%s310_s8] sm:$0xff]   ;;  %v869_v1 = vld [vmem:[%s310_s8 + $0x8] ss:$0 sps:$4 sm:$0x33]   ;;  %486 = vmatprep.subr.bf16.mxu0 %v986_v3  ;;  %s299_s16 = sand.u32 1, %s972_s25   ;;  %s776_s19 = sshll.u32 %s1054_s28, 4 }
  0x2c   : > { %334 = vrot.lane.b32.xlu0 %v868_v0, %s985_s15  ;;  %v870_v12 = vld [vmem:[%s1107_s13] sm:$0xff]   ;;  %v871_v16 = vld [vmem:[%s1107_s13 + $0x8] ss:$0 sps:$4 sm:$0x33]   ;;  %791 = vmatpush3.bf16.msra.mxu1 %v883_v30  ;;  %s988_s13 = smov 32   ;;  %v527_v61 = vadd.s32 8, %v526_v58 }
  0x2d   : > { %792 = vmatprep.subr.bf16.mxu1 %v987_v25  ;;  %v755_v56 = vld [vmem:[%s1202_s3] ss:$0 sm:$0xff]  ;;  %s300_s20 = scalar_lea.vmem [#allocation5], %s299_s16  ;;  %s992_s28 = smov [#allocation5]  }
  0x2e   : > { %487 = vmatpush1.bf16.msra.mxu0 %v874_v5  ;;  %v767_v62 = vld [vmem:[%s1203_s4] ss:$0 sm:$0xff]  ;;  %s664_s21 = sshll.u32 %s300_s20, 4  ;;  %s920_s9 = sshll.u32 %s992_s28, 4  ;;  %s1160_s21 = int_to_ptr.vmem [resolvable:$true] %s664_s21  ;;  %s921_s9 = int_to_ptr.vmem [resolvable:$false] %s920_s9 }
  0x2f   : > { %488 = vmatprep.subr.bf16.mxu0 %v986_v3  ;;  %vm533_vm9 = vcmp.lt.s32.totalorder %v526_v58, %v767_v62  ;;  %vm534_vm10 = vcmp.lt.s32.totalorder %v527_v61, %v767_v62  ;;  %s916_s8 = scalar_lea.vmem %s1160_s21, 16  ;;  %s922_s14 = scalar_lea.vmem %s921_s9, 32 }
  0x30   : > { %336 = vrot.lane.b32.xlu0 %v869_v1, %s985_s15  ;;  %793 = vmatpush3.bf16.msra.mxu1 %v884_v49  ;;  %p917_p6 = scmp.ne.s32.totalorder %s1160_s21, %s916_s8  ;;  %p923_p11 = scmp.lt.s32.totalorder %s1160_s21, %s921_s9 }
  0x31   : > { %794 = vmatprep.subr.bf16.mxu1 %v987_v25  ;;  %p924_p12 = scmp.lt.s32.totalorder %s922_s14, %s916_s8 }
  0x32   : > { %489 = vmatpush1.bf16.msra.mxu0 %v875_v6  ;;  %p918_p9 = pnand %p917_p6, %p1071_p5 }
  0x33   : > { %490 = vmatprep.subr.bf16.mxu0 %v986_v3  ;;  %p925_p13 = por %p924_p12, %p923_p11 }
  0x34   : > { %795 = vmatpush3.bf16.msra.mxu1 %v885_v50  ;;  %p919_p10 = pneg %p918_p9 }
  0x35   : > { %796 = vmatprep.subr.bf16.mxu1 %v987_v25 }
  0x36   : > { %491 = vmatpush1.bf16.msra.mxu0 %v876_v7  ;;  %p926_p0 = pnand %p925_p13, %p919_p10 }
  0x37   : > { %492 = vmatprep.subr.bf16.mxu0 %v986_v3 }
  0x38   : > { %797 = vmatpush3.bf16.msra.mxu1 %v886_v51 }
  0x39   : > { %798 = vmatprep.subr.bf16.mxu1 %v987_v25 }
  0x3a   : > { %493 = vmatpush1.bf16.msra.mxu0 %v877_v8 }
  0x3b   : > { %494 = vmatprep.subr.bf16.mxu0 %v986_v3 }
  0x3c   : > { %799 = vmatpush3.bf16.msra.mxu1 %v887_v52 }
  0x3d   : > { %800 = vmatprep.subr.bf16.mxu1 %v987_v25 }
  0x3e   : > { %495 = vmatpush1.bf16.msra.mxu0 %v878_v9 }
  0x3f   : > { %496 = vmatprep.subr.bf16.mxu0 %v986_v3 }
  0x40   : > { %801 = vmatpush3.bf16.msra.mxu1 %v888_v53 }
  0x41   : > { %802 = vmatprep.subr.bf16.mxu1 %v987_v25 }
  0x42   : > { %497 = vmatpush1.bf16.msra.mxu0 %v879_v10 }
  0x43   : > { %510 = vmatprep.subr.bf16.mxu0 %v986_v3 }
  0x44   : > { %803 = vmatpush3.bf16.msra.mxu1 %v889_v54 }
  0x46   : > { %511 = vmatpush2.bf16.msra.mxu0 %v880_v11 }
  0x47   : > { %512 = vmatprep.subr.bf16.mxu0 %v986_v3 }
  0x4a   : > { %513 = vmatpush2.bf16.msra.mxu0 %v881_v13 }
  0x9e   : > { %v335_v14 = vpop.permute.xlu0 %334 }
  0x9f   : > { %v341_v15 = vsel %vm338_vm0, %v870_v12, %v335_v14  ;;  %v561_v14 = vld [vmem:[%s1205_s6] sm:$0x1] }
  0xa0   : > { %v348_v17 = vshll.u32 %v341_v15, 16  ;;  %v346_v18 = vshrl.u32 %v341_v15, 16  ;;  %v379_v23 = vrot.slane %v341_v15, 2  ;;  %v361_v41 = vrot.slane %v341_v15, 1 }
  0xa2   : > { %v337_v19 = vpop.permute.xlu0 %336  ;;  %v350_v20 = vrot.slane %v348_v17, 1  ;;  %v367_v24 = vrot.slane %v346_v18, 1  ;;  %v368_v29 = vrot.slane %v348_v17, 2 }
  0xa3   : > { %v344_v22 = vsel %vm338_vm0, %v871_v16, %v337_v19 }
  0xa4   : > { %v352_v26 = vshll.u32 %v344_v22, 16  ;;  %v370_v27 = vshrl.u32 %v344_v22, 16  ;;  %v380_v28 = vrot.slane %v344_v22, 2  ;;  %v351_v31 = vor.u32 %v350_v20, %v346_v18 }
  0xa5   : > { %v362_v36 = vrot.slane %v344_v22, 1  ;;  %v369_v38 = vor.u32 %v368_v29, %v367_v24 }
  0xa6   : > { %v372_v32 = vrot.slane %v370_v27, 1  ;;  %v373_v33 = vrot.slane %v352_v26, 2  ;;  %v381_v34 = vsel %vm378_vm1, %v379_v23, %v380_v28  ;;  %v354_v35 = vrot.slane %v352_v26, 1 }
  0xa7   : > { %766 = vmatprep.mubr.msk.bf16.mxu0 %vm382_vm2, %v381_v34  ;;  %v363_v42 = vsel %vm360_vm5, %v361_v41, %v362_v36 }
  0xa8   : > { %v355_v37 = vsel %vm345_vm3, %v351_v31, %v354_v35  ;;  %v374_v39 = vor.u32 %v373_v33, %v372_v32 }
  0xa9   : > { %356 = vrot.lane.b32.xlu1 %v355_v37, %s988_s13 }
  0xaa   : > { %v375_v40 = vsel %vm366_vm4, %v369_v38, %v374_v39 }
  0xab   : > { %376 = vrot.lane.b32.xlu0 %v375_v40, %s989_s23  ;;  %s1158_s23 = scalar_lea.hbm %s1206_s7, %s776_s19 }
  0xad   : > { %364 = vrot.lane.b32.xlu1 %v363_v42, %s990_s29  ;;  %s652_s29 = scalar_lea.sflag [#allocation4], %s299_s16 }
 0x11b   : > { %v357_v43 = vpop.permute.xlu1 %356 }
 0x11c   : > { %v384_v44 = vsel %vm382_vm2, %v341_v15, %v357_v43 }
 0x11d   : > { %v377_v46 = vpop.permute.xlu0 %376 }
 0x11f   : > { %v365_v45 = vpop.permute.xlu1 %364 }
 0x120   : > { %v387_v47 = vsel %vm385_vm6, %v384_v44, %v365_v45 }
 0x121   : > { %v390_v48 = vsel %vm388_vm7, %v387_v47, %v377_v46 }
 0x122   : > { %515 = vmatmul.mubr.bf16.vlgmr.msra.gmra.mxu0 %v390_v48 }
 0x1e2   : > { %v516_v57 = vpop.f32.mrf.mxu0 }
 0x1e3   : > { %v517_v59 = vadd.f32 %v755_v56, %v516_v57 }
 0x1e4   : > { %v518_v60 = vpop.f32.mrf.mxu0 }
 0x1e5   : > { %v523_v0 = vmax.f32 %v517_v59, 0.0 }
 0x1e6   : > { %v519_v63 = vpop.f32.mrf.mxu0 }
 0x1e7   : > { %v520_v1 = vadd.f32 %v755_v56, %v519_v63  ;;  %v535_v4 = vsel %vm533_vm9, %v523_v0, 0.0 }
 0x1e8   : > { %v521_v2 = vpop.f32.mrf.mxu0 }
 0x1e9   : > { %v524_v3 = vmax.f32 %v520_v1, 0.0 }
 0x1eb   : > { %v536_v5 = vsel %vm534_vm10, %v524_v3, 0.0 }
 0x1ec   : > { %v537_v6 = vmax.f32 %v535_v4, %v536_v5 }
 0x1ee   : > { %v538_v7 = vrot.slane %v537_v6, 4 }
 0x1f0   : > { %v539_v8 = vmax.f32 %v537_v6, %v538_v7 }
 0x1f2   : > { %v540_v9 = vrot.slane %v539_v8, 2 }
 0x1f4   : > { %v541_v10 = vmax.f32 %v539_v8, %v540_v9 }
 0x1f6   : > { %v542_v11 = vrot.slane %v541_v10, 1 }
 0x1f8   : > { %v543_v12 = vmax.f32 %v541_v10, %v542_v11 }
 0x1fa   : > { %v544_v13 = vpack.c.bf16 %v543_v12, %v543_v12 }
 0x1fc   : > { %805 = vmatmul.mubr.bf16.vlgmr.msra.gmra.mxu1 %v544_v13 }
 0x2bc   : > { %v644_v15 = vpop.f32.mrf.mxu1 }
 0x2bd   : > { %v645_v16 = vadd.f32 %v644_v15, %v561_v14 }
 0x2be   : > { %v806_v17 = vpop.f32.mrf.mxu1 }
 0x2bf   : > { %650 = vst [vmem:[%s300_s20] sm:$0x1] %v645_v16 }
 0x2c0   : > { %v647_v18 = vpop.f32.mrf.mxu1 }
 0x2c1   : > { %929 = shalt.err (!%p926_p0)
}
 0x2c2   : > { %s930_s15 = scalar_lea.hbm %s1158_s23, 16  ;;  %s934_s18 = scalar_lea.hbm %s1206_s7, 32 }
 0x2c3   : > { %p931_p1 = scmp.ne.s32.totalorder %s1158_s23, %s930_s15  ;;  %p935_p4 = scmp.lt.s32.totalorder %s1158_s23, %s1206_s7 }
 0x2c4   : > { %p936_p7 = scmp.lt.s32.totalorder %s934_s18, %s930_s15 }
 0x2c5   : > { %p932_p2 = pnand %p931_p1, %p1071_p5 }
 0x2c6   : > { %p937_p8 = por %p936_p7, %p935_p4 }
 0x2c7   : > { %p933_p3 = pneg %p932_p2 }
 0x2c9   : > { %p938_p6 = pnand %p937_p8, %p933_p3 }
 0x2cb   : > { %941 = shalt.err (!%p938_p6)
}
 0x2cc   : > { %813 = dma.vmem_to_hbm [thread:$0]  (%p1071_p5), %s1160_s21, 16, %s1158_s23, %s652_s29   ;;  %v807_v19 = vpop.f32.mrf.mxu1 }
 0x2cd PF: > { %p825_p9 = scmp.ge.s32.totalorder %s980_s27, 2  ;;  %s676_s22 = sand.u32 1, %s968_s24  }
 0x2ce   : > { %p1210_p10 = scmp.ne.s32.totalorder %s1208_s12, 0  ;;  %s677_s13 = scalar_lea.sflag [#allocation4], %s676_s22 }
 0x2d0   : > { %p820_p11 = pnand %p825_p9, %p1210_p10 }
 0x2d2   : > { %p821_p12 = pneg %p820_p11 }
 0x2d4   : > { %963 = dma.done.wait (%p821_p12), %s677_s13, 16  }
 0x2d5   : > { %965 = vsyncadd (%p821_p12), %s677_s13, 4294967280  ;;  %p18_p13 = scmp.ge.s32.totalorder %s1058_s30, 4   ;;  %s1211_s24 = smov %s972_s25 }
 0x2d6   : > { %s1212_s25 = smov %s976_s26  ;;  %s1213_s26 = smov %s1069_s10 }
 0x2d7   : > { %s1214_s27 = smov %s1058_s30  ;;  %20 = sbr.rel (!%p18_p13) target bundleno = 4 (0x4), region = 91 }
 0x2dc   :  { %681 = vsyncpa [#allocation3], 1 }
 0x2dd   :  { %683 = vsyncpa [#allocation3 + $0x1], 1 }
 0x2de   :  { %684 = vsyncpa [#allocation4], 1 }
 0x2df   :  { %686 = vsyncpa [#allocation4 + $0x1], 1 }

</bundles_post_ra>
